<compile_context>
chip_gen: v7x
topology: tpu7x:2x2x1
jax: 0.10.0
libtpu: 0.0.40
codegen_flags: <defaults>
</compile_context>

<pallas_src>
import math
import functools

import jax
import jax.numpy as jnp
from jax.experimental import pallas as pl
from jax.experimental.pallas import tpu as pltpu

BN_EPS = 1e-5


def _round_up(n, m=128):
    return ((n + m - 1) // m) * m


def _make_kernel(n_hidden):
    """Fused kernel: n_hidden x (bias-free Linear + folded BN(train) + ReLU) + merged head."""

    def kernel(*refs):
        # refs layout:
        #   x_ref (B, in) bf16,
        #   [W_l (K_l, Hpad_l) bf16, gb_l (2, Hpad_l) f32] * n_hidden,
        #   W_head (K_h, head_pad) bf16, b_head (1, head_pad) f32,
        #   out_ref (B, head_pad) f32
        x_ref = refs[0]
        h = x_ref[...]                       # bf16, no f32 round-trip
        idx = 1

        for _ in range(n_hidden):
            w_ref, gb_ref = refs[idx], refs[idx + 1]
            idx += 2
            # bf16 operands on the MXU, f32 accumulation.
            z = jnp.dot(h, w_ref[...], preferred_element_type=jnp.float32)
            # Single-pass BN stats: mean and E[z^2] (independent reductions, no
            # (z - mean) pass); var = E[z^2] - mean^2 in f32 -> cancellation is
            # negligible at these widths.  max(.,0) guards rounding on
            # near-zero-variance (incl. padded) columns.
            mean = jnp.mean(z, axis=0, keepdims=True)
            mean_sq = jnp.mean(z * z, axis=0, keepdims=True)
            var = jnp.maximum(mean_sq - mean * mean, 0.0)
            # Folded BN (training-mode) + ReLU, single FMA.  Padded lanes have
            # gamma=beta=0 -> scale=shift=0 -> stay exactly 0.
            scale = gb_ref[0:1, :] * jax.lax.rsqrt(var + BN_EPS)   # gamma*rsqrt(var+eps)
            shift = gb_ref[1:2, :] - mean * scale                  # beta - mean*scale
            h = jnp.maximum(z * scale + shift, 0.0).astype(jnp.bfloat16)

        w_ref, b_ref, out_ref = refs[idx], refs[idx + 1], refs[idx + 2]
        # Merged mu|log_sigma head: one matmul, one lane-dense store.
        out_ref[...] = (jnp.dot(h, w_ref[...], preferred_element_type=jnp.float32)
                        + b_ref[...]).astype(out_ref.dtype)

    return kernel


def init_params(key, layers):
    """Deterministic PyTorch-style init.

    nn.Linear: U(-1/sqrt(fan_in), 1/sqrt(fan_in)) for weight and bias.
    nn.BatchNorm1d: gamma=1, beta=0.
    Weights returned as (in, out) (already transposed for x @ W).
    """
    params = []
    for _in, _out in zip(layers[:-2], layers[1:-1]):
        key, kw, kb = jax.random.split(key, 3)
        bound = 1.0 / math.sqrt(_in)
        w = jax.random.uniform(kw, (_in, _out), jnp.float32, -bound, bound)
        b = jax.random.uniform(kb, (1, _out), jnp.float32, -bound, bound)
        gamma = jnp.ones((1, _out), jnp.float32)
        beta = jnp.zeros((1, _out), jnp.float32)
        params += [w, b, gamma, beta]
    _in, _out = layers[-2], layers[-1]
    bound = 1.0 / math.sqrt(_in)
    for _ in range(2):
        key, kw, kb = jax.random.split(key, 3)
        w = jax.random.uniform(kw, (_in, _out), jnp.float32, -bound, bound)
        b = jax.random.uniform(kb, (1, _out), jnp.float32, -bound, bound)
        params += [w, b]
    return params


def prepare_params(params, layers):
    """ONE-TIME repack of PyTorch-style params into kernel-ready, lane-dense arrays.

    Returns a flat tuple:
      [W_l (K_l, Hpad_l) bf16, gb_l (2, Hpad_l) f32] * n_hidden,
      W_head (K_h, head_pad) bf16, b_head (1, head_pad) f32
    All padding is zeros so padded lanes stay exactly 0 through the whole net.
    Hidden Linear biases are dropped (exactly cancelled by training-mode BN).
    """
    n_hidden = len(layers) - 2
    packed = []
    idx = 0
    k_pad = layers[0]                       # width of the activation feeding the next layer
    for li in range(n_hidden):
        w, _b, gamma, beta = params[idx:idx + 4]
        idx += 4
        out = layers[li + 1]
        out_pad = _round_up(out)
        w_p = jnp.zeros((k_pad, out_pad), jnp.float32).at[:w.shape[0], :out].set(w)
        gb = jnp.zeros((2, out_pad), jnp.float32)
        gb = gb.at[0, :out].set(gamma.reshape(-1)).at[1, :out].set(beta.reshape(-1))
        packed.append(w_p.astype(jnp.bfloat16))
        packed.append(gb)
        k_pad = out_pad

    w_mu, b_mu, w_ls, b_ls = params[idx:idx + 4]
    out_dim = layers[-1]
    head_pad = _round_up(2 * out_dim)
    w_head = jnp.zeros((k_pad, head_pad), jnp.float32)
    w_head = w_head.at[:w_mu.shape[0], :out_dim].set(w_mu)
    w_head = w_head.at[:w_ls.shape[0], out_dim:2 * out_dim].set(w_ls)
    b_head = jnp.zeros((1, head_pad), jnp.float32)
    b_head = b_head.at[:, :out_dim].set(b_mu.reshape(1, -1))
    b_head = b_head.at[:, out_dim:2 * out_dim].set(b_ls.reshape(1, -1))
    packed.append(w_head.astype(jnp.bfloat16))
    packed.append(b_head)
    return tuple(jax.device_put(p) for p in packed)


@functools.partial(jax.jit, static_argnames=("layers",))
def dense_gaussian_net(x, packed, layers):
    """Fused forward pass with pre-packed params. Returns (mu, log_sigma), each (B, layers[-1])."""
    n_hidden = len(layers) - 2
    B = x.shape[0]
    out_dim = layers[-1]
    head_pad = packed[-1].shape[-1]

    # Only per-call runtime op besides the kernel: single bf16 cast of x.
    kernel_inputs = [x.astype(jnp.bfloat16)] + list(packed)

    # vmem_limit derived from the actual resident footprint (weights + activations
    # + output + double-buffer/temporary headroom), clamped to 3/4 of physical VMEM.
    resident = sum(int(a.size) * a.dtype.itemsize for a in kernel_inputs)
    resident += B * head_pad * 4                                  # output slab
    max_width = max(p.shape[-1] for p in packed[1::2])            # widest padded layer
    act_headroom = 4 * B * max_width * 4                          # f32/bf16 temporaries
    try:
        phys_vmem = int(pltpu.get_tpu_info().vmem_capacity_bytes)
    except Exception:
        phys_vmem = 64 << 20                                      # conservative (v7x)
    vmem_limit = int(min(max(2 * resident + act_headroom + (4 << 20), 16 << 20),
                         (phys_vmem * 3) // 4))

    vmem = pl.BlockSpec(memory_space=pltpu.MemorySpace.VMEM)
    out = pl.pallas_call(
        _make_kernel(n_hidden),
        out_shape=jax.ShapeDtypeStruct((B, head_pad), jnp.float32),
        in_specs=[vmem] * len(kernel_inputs),
        out_specs=vmem,
        compiler_params=pltpu.CompilerParams(vmem_limit_bytes=vmem_limit),
    )(*kernel_inputs)

    return out[:, :out_dim], out[:, out_dim:2 * out_dim]


def _reference_f32(x, params, layers):
    """Pure-JAX f32 reference matching the PyTorch module exactly (with hidden biases)."""
    n_hidden = len(layers) - 2
    h = x.astype(jnp.float32)
    idx = 0
    for _ in range(n_hidden):
        w, b, g, be = params[idx:idx + 4]
        idx += 4
        h = h @ w + b
        mean = jnp.mean(h, axis=0, keepdims=True)
        var = jnp.mean(jnp.square(h - mean), axis=0, keepdims=True)
        h = (h - mean) / jnp.sqrt(var + BN_EPS) * g + be
        h = jnp.maximum(h, 0.0)
    w_mu, b_mu, w_ls, b_ls = params[idx:idx + 4]
    return h @ w_mu + b_mu, h @ w_ls + b_ls


def _reference_bf16(x, params, layers):
    """Pure-JAX mirror of the kernel math (bf16 MXU operands, single-pass BN stats,
    folded BN, no hidden bias)."""
    n_hidden = len(layers) - 2
    h = x.astype(jnp.bfloat16)
    idx = 0
    for _ in range(n_hidden):
        w, _b, g, be = params[idx:idx + 4]
        idx += 4
        z = jnp.dot(h, w.astype(jnp.bfloat16), preferred_element_type=jnp.float32)
        mean = jnp.mean(z, axis=0, keepdims=True)
        mean_sq = jnp.mean(z * z, axis=0, keepdims=True)
        var = jnp.maximum(mean_sq - mean * mean, 0.0)
        scale = g * jax.lax.rsqrt(var + BN_EPS)
        shift = be - mean * scale
        h = jnp.maximum(z * scale + shift, 0.0).astype(jnp.bfloat16)
    w_mu, b_mu, w_ls, b_ls = params[idx:idx + 4]
    mu = jnp.dot(h, w_mu.astype(jnp.bfloat16), preferred_element_type=jnp.float32) + b_mu
    ls = jnp.dot(h, w_ls.astype(jnp.bfloat16), preferred_element_type=jnp.float32) + b_ls
    return mu, ls


if __name__ == "__main__":
    # Small shapes: layers = [in=16, hidden=32, hidden=32, out=8], batch=8.
    layers = (16, 32, 32, 8)
    batch = 8

    key = jax.random.PRNGKey(0)
    key, kx = jax.random.split(key)
    x = jax.random.normal(kx, (batch, layers[0]), jnp.float32)
    params = init_params(key, layers)

    # One-time repack (outside the per-call path).
    packed = prepare_params(params, layers)

    mu, log_sigma = dense_gaussian_net(x, packed, layers)
    jax.block_until_ready((mu, log_sigma))

    assert mu.shape == (batch, layers[-1]) and log_sigma.shape == (batch, layers[-1])

    # Tight check vs. an exact pure-JAX mirror of the kernel math.
    mu_b16, ls_b16 = _reference_bf16(x, params, layers)
    assert jnp.allclose(mu, mu_b16, atol=2e-3, rtol=2e-3)
    assert jnp.allclose(log_sigma, ls_b16, atol=2e-3, rtol=2e-3)

    # Semantic check vs. the exact f32 PyTorch-equivalent reference
    # (looser tolerance accounts for bf16 MXU matmuls in the kernel).
    mu_f32, ls_f32 = _reference_f32(x, params, layers)
    assert jnp.allclose(mu, mu_f32, atol=5e-2, rtol=5e-2)
    assert jnp.allclose(log_sigma, ls_f32, atol=5e-2, rtol=5e-2)

    print("KERNEL_OK")
</pallas_src>

<mosaic_0001>
module attributes {stable_mosaic.version = 11 : i64} {
  func.func @kernel(%arg0: memref<8x16xbf16, #tpu.memory_space<vmem>>, %arg1: memref<16x128xbf16, #tpu.memory_space<vmem>>, %arg2: memref<2x128xf32, #tpu.memory_space<vmem>>, %arg3: memref<128x128xbf16, #tpu.memory_space<vmem>>, %arg4: memref<2x128xf32, #tpu.memory_space<vmem>>, %arg5: memref<128x128xbf16, #tpu.memory_space<vmem>>, %arg6: memref<1x128xf32, #tpu.memory_space<vmem>>, %arg7: memref<8x128xf32, #tpu.memory_space<vmem>>) attributes {dimension_semantics = [], scalar_prefetch = 0 : i64, scratch_operands = 0 : i64, tpu.core_type = #tpu.core_type<tc>} {
    %c0 = arith.constant 0 : index
    %c0_0 = arith.constant 0 : index
    %0 = vector.load %arg0[%c0, %c0_0] : memref<8x16xbf16, #tpu.memory_space<vmem>>, vector<8x16xbf16>
    %c0_1 = arith.constant 0 : index
    %c0_2 = arith.constant 0 : index
    %1 = vector.load %arg1[%c0_1, %c0_2] : memref<16x128xbf16, #tpu.memory_space<vmem>>, vector<16x128xbf16>
    %cst = arith.constant dense<0.000000e+00> : vector<8x128xf32>
    %2 = tpu.matmul %0, %1, %cst {dimension_numbers = #tpu.dot_dimension_numbers<[1], [0], [0], [1], [0, 0, 1, 1], [], []>} : vector<8x16xbf16>, vector<16x128xbf16>, vector<8x128xf32> -> vector<8x128xf32>
    %cst_3 = arith.constant dense<0.000000e+00> : vector<128xf32>
    %3 = vector.multi_reduction <add>, %2, %cst_3 [0] : vector<8x128xf32> to vector<128xf32>
    %4 = vector.shape_cast %3 : vector<128xf32> to vector<1x128xf32>
    %cst_4 = arith.constant 8.000000e+00 : f32
    %5 = vector.broadcast %cst_4 : f32 to vector<1x128xf32>
    %6 = arith.divf %4, %5 : vector<1x128xf32>
    %7 = arith.mulf %2, %2 : vector<8x128xf32>
    %cst_5 = arith.constant dense<0.000000e+00> : vector<128xf32>
    %8 = vector.multi_reduction <add>, %7, %cst_5 [0] : vector<8x128xf32> to vector<128xf32>
    %9 = vector.shape_cast %8 : vector<128xf32> to vector<1x128xf32>
    %cst_6 = arith.constant 8.000000e+00 : f32
    %10 = vector.broadcast %cst_6 : f32 to vector<1x128xf32>
    %11 = arith.divf %9, %10 : vector<1x128xf32>
    %12 = arith.mulf %6, %6 : vector<1x128xf32>
    %13 = arith.subf %11, %12 : vector<1x128xf32>
    %cst_7 = arith.constant 0.000000e+00 : f32
    %14 = vector.broadcast %cst_7 : f32 to vector<1x128xf32>
    %15 = arith.maximumf %13, %14 : vector<1x128xf32>
    %c0_8 = arith.constant 0 : index
    %c0_9 = arith.constant 0 : index
    %16 = vector.load %arg2[%c0_8, %c0_9] : memref<2x128xf32, #tpu.memory_space<vmem>>, vector<1x128xf32>
    %cst_10 = arith.constant 9.99999974E-6 : f32
    %17 = vector.broadcast %cst_10 : f32 to vector<1x128xf32>
    %18 = arith.addf %15, %17 : vector<1x128xf32>
    %19 = math.rsqrt %18 : vector<1x128xf32>
    %20 = arith.mulf %16, %19 : vector<1x128xf32>
    %c1 = arith.constant 1 : index
    %c0_11 = arith.constant 0 : index
    %21 = vector.load %arg2[%c1, %c0_11] : memref<2x128xf32, #tpu.memory_space<vmem>>, vector<1x128xf32>
    %22 = arith.mulf %6, %20 : vector<1x128xf32>
    %23 = arith.subf %21, %22 : vector<1x128xf32>
    %24 = vector.broadcast %20 : vector<1x128xf32> to vector<8x128xf32>
    %25 = arith.mulf %2, %24 : vector<8x128xf32>
    %26 = vector.broadcast %23 : vector<1x128xf32> to vector<8x128xf32>
    %27 = arith.addf %25, %26 : vector<8x128xf32>
    %cst_12 = arith.constant 0.000000e+00 : f32
    %28 = vector.broadcast %cst_12 : f32 to vector<8x128xf32>
    %29 = arith.maximumf %27, %28 : vector<8x128xf32>
    %30 = arith.truncf %29 : vector<8x128xf32> to vector<8x128xbf16>
    %c0_13 = arith.constant 0 : index
    %c0_14 = arith.constant 0 : index
    %31 = vector.load %arg3[%c0_13, %c0_14] : memref<128x128xbf16, #tpu.memory_space<vmem>>, vector<128x128xbf16>
    %cst_15 = arith.constant dense<0.000000e+00> : vector<8x128xf32>
    %32 = tpu.matmul %30, %31, %cst_15 {dimension_numbers = #tpu.dot_dimension_numbers<[1], [0], [0], [1], [0, 0, 1, 1], [], []>} : vector<8x128xbf16>, vector<128x128xbf16>, vector<8x128xf32> -> vector<8x128xf32>
    %cst_16 = arith.constant dense<0.000000e+00> : vector<128xf32>
    %33 = vector.multi_reduction <add>, %32, %cst_16 [0] : vector<8x128xf32> to vector<128xf32>
    %34 = vector.shape_cast %33 : vector<128xf32> to vector<1x128xf32>
    %cst_17 = arith.constant 8.000000e+00 : f32
    %35 = vector.broadcast %cst_17 : f32 to vector<1x128xf32>
    %36 = arith.divf %34, %35 : vector<1x128xf32>
    %37 = arith.mulf %32, %32 : vector<8x128xf32>
    %cst_18 = arith.constant dense<0.000000e+00> : vector<128xf32>
    %38 = vector.multi_reduction <add>, %37, %cst_18 [0] : vector<8x128xf32> to vector<128xf32>
    %39 = vector.shape_cast %38 : vector<128xf32> to vector<1x128xf32>
    %cst_19 = arith.constant 8.000000e+00 : f32
    %40 = vector.broadcast %cst_19 : f32 to vector<1x128xf32>
    %41 = arith.divf %39, %40 : vector<1x128xf32>
    %42 = arith.mulf %36, %36 : vector<1x128xf32>
    %43 = arith.subf %41, %42 : vector<1x128xf32>
    %cst_20 = arith.constant 0.000000e+00 : f32
    %44 = vector.broadcast %cst_20 : f32 to vector<1x128xf32>
    %45 = arith.maximumf %43, %44 : vector<1x128xf32>
    %c0_21 = arith.constant 0 : index
    %c0_22 = arith.constant 0 : index
    %46 = vector.load %arg4[%c0_21, %c0_22] : memref<2x128xf32, #tpu.memory_space<vmem>>, vector<1x128xf32>
    %cst_23 = arith.constant 9.99999974E-6 : f32
    %47 = vector.broadcast %cst_23 : f32 to vector<1x128xf32>
    %48 = arith.addf %45, %47 : vector<1x128xf32>
    %49 = math.rsqrt %48 : vector<1x128xf32>
    %50 = arith.mulf %46, %49 : vector<1x128xf32>
    %c1_24 = arith.constant 1 : index
    %c0_25 = arith.constant 0 : index
    %51 = vector.load %arg4[%c1_24, %c0_25] : memref<2x128xf32, #tpu.memory_space<vmem>>, vector<1x128xf32>
    %52 = arith.mulf %36, %50 : vector<1x128xf32>
    %53 = arith.subf %51, %52 : vector<1x128xf32>
    %54 = vector.broadcast %50 : vector<1x128xf32> to vector<8x128xf32>
    %55 = arith.mulf %32, %54 : vector<8x128xf32>
    %56 = vector.broadcast %53 : vector<1x128xf32> to vector<8x128xf32>
    %57 = arith.addf %55, %56 : vector<8x128xf32>
    %cst_26 = arith.constant 0.000000e+00 : f32
    %58 = vector.broadcast %cst_26 : f32 to vector<8x128xf32>
    %59 = arith.maximumf %57, %58 : vector<8x128xf32>
    %60 = arith.truncf %59 : vector<8x128xf32> to vector<8x128xbf16>
    %c0_27 = arith.constant 0 : index
    %c0_28 = arith.constant 0 : index
    %61 = vector.load %arg5[%c0_27, %c0_28] : memref<128x128xbf16, #tpu.memory_space<vmem>>, vector<128x128xbf16>
    %cst_29 = arith.constant dense<0.000000e+00> : vector<8x128xf32>
    %62 = tpu.matmul %60, %61, %cst_29 {dimension_numbers = #tpu.dot_dimension_numbers<[1], [0], [0], [1], [0, 0, 1, 1], [], []>} : vector<8x128xbf16>, vector<128x128xbf16>, vector<8x128xf32> -> vector<8x128xf32>
    %c0_30 = arith.constant 0 : index
    %c0_31 = arith.constant 0 : index
    %63 = vector.load %arg6[%c0_30, %c0_31] : memref<1x128xf32, #tpu.memory_space<vmem>>, vector<1x128xf32>
    %64 = vector.broadcast %63 : vector<1x128xf32> to vector<8x128xf32>
    %65 = arith.addf %62, %64 : vector<8x128xf32>
    %c0_32 = arith.constant 0 : index
    %c0_33 = arith.constant 0 : index
    %66 = vector.load %arg7[%c0_32, %c0_33] : memref<8x128xf32, #tpu.memory_space<vmem>>, vector<8x128xf32>
    tpu.vector_store %arg7[%c0_32, %c0_33], %65 {strides = array<i32>} : memref<8x128xf32, #tpu.memory_space<vmem>>, vector<8x128xf32>,
    return
  }
}

</mosaic_0001>

<bundles_post_ra>
// kernel: dense_gaussian_net.1
= control target key start
LH: loop header
LB: loop body
LE: loop exit
PB: predicated region body
PF: predicated region fallthrough
CT: control target
= control target key end

     0   :  { %12 = vsyncpa [#allocation3], 0  ;;  %s685_s0 = inlined_call_operand.vmem [shape: bf16[8,16], index: 0, kind: input, shape index: {}]   ;;  %s686_s1 = inlined_call_operand.vmem [shape: bf16[16,128], index: 1, kind: input, shape index: {}]   ;;  %s687_s2 = inlined_call_operand.vmem [shape: f32[2,128], index: 2, kind: input, shape index: {}]   ;;  %s688_s3 = inlined_call_operand.hbm [shape: bf16[128,128], index: 3, kind: input, shape index: {}]   ;;  %s689_s4 = inlined_call_operand.vmem [shape: f32[2,128], index: 4, kind: input, shape index: {}]   ;;  %s690_s5 = inlined_call_operand.hbm [shape: bf16[128,128], index: 5, kind: input, shape index: {}]   ;;  %s691_s6 = inlined_call_operand.vmem [shape: f32[1,128], index: 6, kind: input, shape index: {}]   ;;  %s692_s7 = inlined_call_operand.vmem [shape: f32[8,128], index: 7, kind: output, shape index: {}]  }
   0x1   :  { %13 = vsyncpa [#allocation5], 0  ;;  %s565_s24 = smov [#allocation2]   ;;  %s517_s28 = scalar_lea.hbm %s688_s3, 1024 }
   0x2   :  { %s25_s25 = sshll.u32 %s565_s24, 4  ;;  %p518_p0 = scmp.ne.s32.totalorder %s688_s3, %s517_s28  ;;  %s26_s25 = int_to_ptr.vmem [resolvable:$true] %s25_s25 }
   0x3   :  { %p521_p1 = scmp.lt.u32.totalorder %s517_s28, %s688_s3 }
   0x5   :  { %p523_p2 = pnand %p521_p1, %p518_p0 }
   0x7   :  { %526 = shalt.err (!%p523_p2)
}
   0x8   :  { %s527_s10 = scalar_lea.vmem %s26_s25, 1024  ;;  %p532_p4 = scmp.lt.s32.totalorder %s26_s25, %s26_s25 }
   0x9   :  { %p528_p3 = scmp.ne.s32.totalorder %s26_s25, %s527_s10  ;;  %p533_p5 = scmp.lt.s32.totalorder %s527_s10, %s527_s10 }
   0xb   :  { %p534_p6 = por %p533_p5, %p532_p4 }
   0xd   :  { %p535_p7 = pnand %p534_p6, %p528_p3 }
   0xf   :  { %538 = shalt.err (!%p535_p7)
}
  0x10   :  { %s566_s11 = smov 64   ;;  %s567_s12 = smov 4  }
  0x11   :  { %31 = dma.hbm_to_vmem [thread:$0]  %s688_s3, 1024, %s26_s25, [#allocation3], %s566_s11, %s566_s11, %s567_s12  }
  0x12   :  { %s568_s15 = smov [#allocation4]   ;;  %s539_s19 = scalar_lea.hbm %s690_s5, 1024 }
  0x13   :  { %s39_s16 = sshll.u32 %s568_s15, 4  ;;  %p540_p8 = scmp.ne.s32.totalorder %s690_s5, %s539_s19  ;;  %s40_s16 = int_to_ptr.vmem [resolvable:$true] %s39_s16 }
  0x14   :  { %p543_p9 = scmp.lt.u32.totalorder %s539_s19, %s690_s5 }
  0x16   :  { %p545_p10 = pnand %p543_p9, %p540_p8 }
  0x18   :  { %548 = shalt.err (!%p545_p10)
}
  0x19   :  { %s549_s24 = scalar_lea.vmem %s40_s16, 1024  ;;  %p554_p12 = scmp.lt.s32.totalorder %s40_s16, %s40_s16 }
  0x1a   :  { %p550_p11 = scmp.ne.s32.totalorder %s40_s16, %s549_s24  ;;  %p555_p13 = scmp.lt.s32.totalorder %s549_s24, %s549_s24 }
  0x1c   :  { %p556_p0 = por %p555_p13, %p554_p12 }
  0x1e   :  { %p557_p1 = pnand %p556_p0, %p550_p11 }
  0x20   :  { %560 = shalt.err (!%p557_p1)
}
  0x21   :  { %45 = dma.hbm_to_vmem [thread:$0]  %s690_s5, 1024, %s40_s16, [#allocation5], %s566_s11, %s566_s11, %s567_s12  }
  0x22   :  { %561 = dma.done.wait [#allocation3], 1024  }
  0x23   :  { %562 = vsyncadd [#allocation3], 4294966272 }
  0x24   :  { %563 = dma.done.wait [#allocation5], 1024  }
  0x25   :  { %564 = vsyncadd [#allocation5], 4294966272  ;;  %v569_v0 = vmov 0.0   ;;  %vm570_vm0 = vmmov 0   ;;  %v496_v1 = vld [vmem:[%s686_s1] sm:$0xff]   ;;  %vm64_vm1 = vcmask 130048   ;;  %v134_v34 = vlaneseq }
  0x26   :  { %444 = vmatprep.subr.bf16.mxu0 %v569_v0  ;;  %446 = vmatprep.mubr.msk.bf16.mxu0 %vm570_vm0, %v569_v0  ;;  %v55_v2 = vld [vmem:[%s685_s0] sm:$0xf]  ;;  %v497_v3 = vld [vmem:[#allocation2] sm:$0xff]   ;;  %v498_v4 = vld [vmem:[#allocation2 + $0x8] sm:$0xff]  }
  0x27   :  { %450 = vmatprep.subr.bf16.mxu1 %v569_v0  ;;  %466 = vmatprep.mubr.msk.bf16.mxu1 %vm570_vm0, %v569_v0  ;;  %v499_v5 = vld [vmem:[#allocation2 + $0x10] sm:$0xff]   ;;  %v500_v6 = vld [vmem:[#allocation2 + $0x18] sm:$0xff]   ;;  %v501_v7 = vld [vmem:[#allocation2 + $0x20] sm:$0xff]   ;;  %v135_v35 = vshrl.u32 %v134_v34, 7 }
  0x28   :  { %445 = vmatpush3.bf16.msra.mxu0 %v496_v1  ;;  %451 = vmatpush3.bf16.msra.mxu1 %v497_v3  ;;  %v502_v8 = vld [vmem:[#allocation2 + $0x28] sm:$0xff]   ;;  %v503_v9 = vld [vmem:[#allocation2 + $0x30] sm:$0xff]   ;;  %v504_v10 = vld [vmem:[#allocation2 + $0x38] sm:$0xff]  }
  0x29   :  { %470 = vmatprep.subr.bf16.mxu0 %v569_v0  ;;  %452 = vmatprep.subr.bf16.mxu1 %v569_v0  ;;  %v127_v36 = vld [vmem:[%s687_s2] sm:$0x1]  ;;  %v657_v37 = vsub.s32 0, %v135_v35  ;;  %v131_v40 = vld [vmem:[%s687_s2 + $0x1] sm:$0x1]  ;;  %v505_v49 = vld [vmem:[#allocation4] sm:$0xff]  }
  0x2a   :  { %v506_v50 = vld [vmem:[#allocation4 + $0x8] sm:$0xff]   ;;  %v507_v51 = vld [vmem:[#allocation4 + $0x10] sm:$0xff]   ;;  %v508_v52 = vld [vmem:[#allocation4 + $0x18] sm:$0xff]  }
  0x2b   :  { %447 = vmatmul.mubr.msk.bf16.vlgmr.msra.gmra.mrb[0].mxu0 %vm64_vm1, %v55_v2  ;;  %v509_v53 = vld [vmem:[#allocation4 + $0x20] sm:$0xff]   ;;  %v510_v54 = vld [vmem:[#allocation4 + $0x28] sm:$0xff]   ;;  %v511_v55 = vld [vmem:[#allocation4 + $0x30] sm:$0xff]  }
  0x2c   :  { %486 = vmatprep.mubr.msk.bf16.mxu0 %vm570_vm0, %v569_v0  ;;  %453 = vmatpush3.bf16.msra.mxu1 %v498_v4  ;;  %v512_v56 = vld [vmem:[#allocation4 + $0x38] sm:$0xff]  }
  0x2d   :  { %454 = vmatprep.subr.bf16.mxu1 %v569_v0  ;;  %471 = vmatpush3.bf16.msra.mxu0 %v505_v49 }
  0x2e   :  { %472 = vmatprep.subr.bf16.mxu0 %v569_v0 }
  0x30   :  { %455 = vmatpush3.bf16.msra.mxu1 %v499_v5 }
  0x31   :  { %456 = vmatprep.subr.bf16.mxu1 %v569_v0  ;;  %473 = vmatpush3.bf16.msra.mxu0 %v506_v50 }
  0x32   :  { %474 = vmatprep.subr.bf16.mxu0 %v569_v0 }
  0x34   :  { %457 = vmatpush3.bf16.msra.mxu1 %v500_v6 }
  0x35   :  { %458 = vmatprep.subr.bf16.mxu1 %v569_v0  ;;  %475 = vmatpush3.bf16.msra.mxu0 %v507_v51 }
  0x36   :  { %476 = vmatprep.subr.bf16.mxu0 %v569_v0 }
  0x38   :  { %459 = vmatpush3.bf16.msra.mxu1 %v501_v7 }
  0x39   :  { %460 = vmatprep.subr.bf16.mxu1 %v569_v0  ;;  %477 = vmatpush3.bf16.msra.mxu0 %v508_v52 }
  0x3a   :  { %478 = vmatprep.subr.bf16.mxu0 %v569_v0 }
  0x3c   :  { %461 = vmatpush3.bf16.msra.mxu1 %v502_v8 }
  0x3d   :  { %462 = vmatprep.subr.bf16.mxu1 %v569_v0  ;;  %479 = vmatpush3.bf16.msra.mxu0 %v509_v53 }
  0x3e   :  { %480 = vmatprep.subr.bf16.mxu0 %v569_v0 }
  0x40   :  { %463 = vmatpush3.bf16.msra.mxu1 %v503_v9 }
  0x41   :  { %464 = vmatprep.subr.bf16.mxu1 %v569_v0  ;;  %481 = vmatpush3.bf16.msra.mxu0 %v510_v54 }
  0x42   :  { %482 = vmatprep.subr.bf16.mxu0 %v569_v0 }
  0x44   :  { %465 = vmatpush3.bf16.msra.mxu1 %v504_v10 }
  0x45   :  { %483 = vmatpush3.bf16.msra.mxu0 %v511_v55 }
  0x46   :  { %484 = vmatprep.subr.bf16.mxu0 %v569_v0 }
  0x49   :  { %485 = vmatpush3.bf16.msra.mxu0 %v512_v56 }
  0xfe   :  { %v102_v11 = vpop.f32.mrb[0].mxu0 }
  0xff   :  { %v108_v12 = vrot.slane %v102_v11, 4  ;;  %v116_v13 = vmul.f32 %v102_v11, %v102_v11  ;;  %v448_v14 = vpop.f32.mrb[1].mxu0 }
 0x100   :  { %v105_v15 = vpop.f32.mrb[2].mxu0 }
 0x101   :  { %v109_v16 = vadd.f32 %v108_v12, %v102_v11  ;;  %v117_v17 = vrot.slane %v116_v13, 4  ;;  %v449_v18 = vpop.f32.mrb[3].mxu0 }
 0x103   :  { %v110_v19 = vrot.slane %v109_v16, 2  ;;  %v118_v20 = vadd.f32 %v117_v17, %v116_v13 }
 0x105   :  { %v111_v21 = vadd.f32 %v110_v19, %v109_v16  ;;  %v119_v22 = vrot.slane %v118_v20, 2  ;;  %v268_v16 = vld [vmem:[%s689_s4] sm:$0x1]  ;;  %v272_v19 = vld [vmem:[%s689_s4 + $0x1] sm:$0x1] }
 0x107   :  { %v112_v23 = vrot.slane %v111_v21, 1  ;;  %v120_v24 = vadd.f32 %v119_v22, %v118_v20 }
 0x109   :  { %v113_v25 = vadd.f32 %v112_v23, %v111_v21  ;;  %v121_v26 = vrot.slane %v120_v24, 1 }
 0x10b   :  { %v115_v27 = vmul.f32 0.125, %v113_v25  ;;  %v122_v28 = vadd.f32 %v121_v26, %v120_v24 }
 0x10d   :  { %v123_v29 = vmul.f32 0.125, %v122_v28  ;;  %v124_v30 = vmul.f32 %v115_v27, %v115_v27  ;;  %v415_v28 = vld [vmem:[%s691_s6] ss:$0 sm:$0xff] }
 0x10f   :  { %v125_v31 = vsub.f32 %v123_v29, %v124_v30 }
 0x111   :  { %v126_v32 = vmax.f32 %v125_v31, 0.0 }
 0x113   :  { %v128_v33 = vadd.f32 1e-05, %v126_v32 }
 0x115   :  { %513 = vrsqrt.f32 %v128_v33 }
 0x11f   :  { %v514_v38 = vpop.eup %513 }
 0x120   :  { %v130_v39 = vmul.f32 %v514_v38, %v127_v36 }
 0x122   :  { %v137_v41 = vrot.slane %v130_v39, %v657_v37  ;;  %v132_v42 = vmul.f32 %v130_v39, %v115_v27 }
 0x124   :  { %v133_v43 = vsub.f32 %v131_v40, %v132_v42  ;;  %v138_v44 = vmul.f32 %v137_v41, %v102_v11 }
 0x126   :  { %v142_v45 = vrot.slane %v133_v43, %v657_v37 }
 0x128   :  { %v143_v46 = vadd.f32 %v142_v45, %v138_v44 }
 0x12a   :  { %v144_v47 = vmax.f32 %v143_v46, 0.0 }
 0x12c   :  { %v145_v48 = vpack.c.bf16 %v144_v47, %v144_v47 }
 0x12e   :  { %467 = vmatmul.mubr.bf16.vlgmr.msra.gmra.mrb[0].mxu1 %v145_v48 }
 0x201   :  { %v244_v57 = vpop.f32.mrb[0].mxu1 }
 0x202   :  { %v250_v58 = vrot.slane %v244_v57, 4  ;;  %v257_v59 = vmul.f32 %v244_v57, %v244_v57  ;;  %v468_v60 = vpop.f32.mrb[1].mxu1 }
 0x203   :  { %v247_v61 = vpop.f32.mrb[2].mxu1 }
 0x204   :  { %v251_v62 = vadd.f32 %v250_v58, %v244_v57  ;;  %v258_v63 = vrot.slane %v257_v59, 4  ;;  %v469_v1 = vpop.f32.mrb[3].mxu1 }
 0x206   :  { %v252_v2 = vrot.slane %v251_v62, 2  ;;  %v259_v3 = vadd.f32 %v258_v63, %v257_v59 }
 0x208   :  { %v253_v4 = vadd.f32 %v252_v2, %v251_v62  ;;  %v260_v5 = vrot.slane %v259_v3, 2 }
 0x20a   :  { %v254_v6 = vrot.slane %v253_v4, 1  ;;  %v261_v7 = vadd.f32 %v260_v5, %v259_v3 }
 0x20c   :  { %v255_v8 = vadd.f32 %v254_v6, %v253_v4  ;;  %v262_v9 = vrot.slane %v261_v7, 1 }
 0x20e   :  { %v256_v10 = vmul.f32 0.125, %v255_v8  ;;  %v263_v0 = vadd.f32 %v262_v9, %v261_v7 }
 0x210   :  { %v264_v11 = vmul.f32 0.125, %v263_v0  ;;  %v265_v12 = vmul.f32 %v256_v10, %v256_v10 }
 0x212   :  { %v266_v13 = vsub.f32 %v264_v11, %v265_v12 }
 0x214   :  { %v267_v14 = vmax.f32 %v266_v13, 0.0 }
 0x216   :  { %v269_v15 = vadd.f32 1e-05, %v267_v14 }
 0x218   :  { %515 = vrsqrt.f32 %v269_v15 }
 0x222   :  { %v516_v17 = vpop.eup %515 }
 0x223   :  { %v271_v18 = vmul.f32 %v516_v17, %v268_v16 }
 0x225   :  { %v273_v20 = vmul.f32 %v271_v18, %v256_v10  ;;  %v278_v21 = vrot.slane %v271_v18, %v657_v37 }
 0x227   :  { %v274_v22 = vsub.f32 %v272_v19, %v273_v20  ;;  %v279_v23 = vmul.f32 %v278_v21, %v244_v57 }
 0x229   :  { %v283_v24 = vrot.slane %v274_v22, %v657_v37 }
 0x22b   :  { %v284_v25 = vadd.f32 %v283_v24, %v279_v23 }
 0x22d   :  { %v285_v26 = vmax.f32 %v284_v25, 0.0 }
 0x22f   :  { %v286_v27 = vpack.c.bf16 %v285_v26, %v285_v26 }
 0x231   :  { %487 = vmatmul.mubr.bf16.vlgmr.msra.gmra.mrb[4].mxu0 %v286_v27 }
 0x304   :  { %v392_v29 = vpop.f32.mrb[4].mxu0 }
 0x305   :  { %v393_v30 = vadd.f32 %v415_v28, %v392_v29  ;;  %v488_v31 = vpop.f32.mrb[5].mxu0 }
 0x306   :  { %v395_v32 = vpop.f32.mrb[6].mxu0 }
 0x307   :  { %398 = vst [vmem:[%s692_s7] sm:$0xff] %v393_v30  ;;  %v489_v33 = vpop.f32.mrb[7].mxu0 }
 0x308   :  { %403 = vsyncpa [#allocation3], 1 }
 0x309   :  { %404 = vsyncpa [#allocation5], 1 }

</bundles_post_ra>
